<compile_context>
chip_gen: v7x
topology: tpu7x:2x2x1
jax: 0.10.0
libtpu: 0.0.40
codegen_flags: <defaults>
</compile_context>

<pallas_src>
import jax
import jax.numpy as jnp
from jax import lax
from jax.experimental import pallas as pl
from jax.experimental.pallas import tpu as pltpu

LANE = 128          # lane width (last dim)
SUBLANE_BF16 = 16   # batch-tile multiple: bf16 sublane packing (2x8)


def _round_up(x, m):
    return (x + m - 1) // m * m


def _pad2(x, rows, cols):
    pr, pc = rows - x.shape[0], cols - x.shape[1]
    if pr or pc:
        x = jnp.pad(x, ((0, pr), (0, pc)))
    return x


def _softplus(x):
    # numerically stable softplus, matches torch.nn.Softplus (beta=1)
    return jnp.maximum(x, 0.0) + jnp.log1p(jnp.exp(-jnp.abs(x)))


def _mlp_apply(h, param_refs, num_linear, use_bf16):
    """Apply the full Linear/activation chain to an f32 activation tile.

    Weights/biases are read from VMEM refs at the point of use (NOT hoisted),
    so regalloc keeps live ranges short; VMEM->vreg reloads feed the MXU directly.
    Weights arrive already in bf16 when use_bf16 (cast done once in the wrapper).
    """
    for i in range(num_linear):
        w = param_refs[2 * i][...]        # bf16 (or f32) weight, loaded per use
        b = param_refs[2 * i + 1][...]    # f32 bias
        lhs = h.astype(jnp.bfloat16) if use_bf16 else h
        h = jnp.dot(lhs, w, preferred_element_type=jnp.float32) + b
        # TODO(synk): optionally compute tanh/softplus in bf16 on v6e/v7x (bf16 EUP)
        # behind a flag; kept f32 here for v5e compatibility and ODE accuracy.
        if i == 0:
            h = jnp.tanh(h)               # first activation: Tanh
        elif i < num_linear - 1:
            h = _softplus(h)              # hidden activations: Softplus
        # last Linear: no activation
    return h


def _make_mlp_kernel(num_linear, use_bf16):
    """Kernel computing one f(t, y) evaluation for one batch tile."""

    def kernel(y_ref, *refs):
        out_ref = refs[-1]
        param_refs = refs[:-1]
        h = y_ref[...].astype(jnp.float32)
        out_ref[...] = _mlp_apply(h, param_refs, num_linear, use_bf16).astype(out_ref.dtype)

    return kernel


def _make_rk4_kernel(num_linear, use_bf16, dt, num_steps):
    """Kernel running `num_steps` fused RK4 steps (4*num_steps RHS evals) per tile.

    Weights stay VMEM-resident (constant index_map, single-buffered) and y is
    carried through the fori_loop, so neither touches HBM between steps.
    """

    def kernel(y_ref, *refs):
        out_ref = refs[-1]
        param_refs = refs[:-1]

        def f(h):
            return _mlp_apply(h, param_refs, num_linear, use_bf16)

        def step(_, y0):
            k1 = f(y0)
            k2 = f(y0 + (0.5 * dt) * k1)
            k3 = f(y0 + (0.5 * dt) * k2)
            k4 = f(y0 + dt * k3)
            return y0 + (dt / 6.0) * (k1 + 2.0 * k2 + 2.0 * k3 + k4)

        y0 = y_ref[...].astype(jnp.float32)
        yN = lax.fori_loop(0, num_steps, step, y0)
        out_ref[...] = yN.astype(out_ref.dtype)

    return kernel


def _pad_inputs(y, params, batch_tile, use_bf16):
    """Zero-pad batch/feature dims to TPU-friendly (sublane, lane) multiples.

    Weights are cast to bf16 here (once, on the host side of the pallas_call)
    when use_bf16, so the kernel DMAs half the bytes and does no per-tile packing.
    """
    B, D_in = y.shape
    Dp_in = _round_up(D_in, LANE)
    Dp_out = _round_up(params[-1][0].shape[1], LANE)

    # Batch tile: multiple of 16 (bf16 packing); big enough to avoid dispatch-bound
    # pipelines but capped so double-buffered I/O tiles stay small in VMEM.
    max_tb_by_vmem = max(SUBLANE_BF16,
                         (8 << 20) // (4 * 4 * max(Dp_in, Dp_out)))
    tb = min(batch_tile, max(B, SUBLANE_BF16), max_tb_by_vmem)
    TB = _round_up(tb, SUBLANE_BF16)
    Bp = _round_up(B, TB)

    y_p = _pad2(y.astype(jnp.float32), Bp, Dp_in)

    wdtype = jnp.bfloat16 if use_bf16 else jnp.float32
    padded_params = []
    for (w, b) in params:
        fin, fout = w.shape
        w_p = _pad2(w.astype(jnp.float32),
                    _round_up(fin, LANE), _round_up(fout, LANE)).astype(wdtype)
        b_p = _pad2(b.astype(jnp.float32), 1, _round_up(fout, LANE))
        padded_params.append((w_p, b_p))
    return y_p, padded_params, TB, Bp, Dp_in


def _resident_spec(shape):
    """BlockSpec for a VMEM-resident operand (constant index_map).

    Buffered(1) drops the default double buffer -> halves resident weight VMEM
    (the key lever on v7x's 64 MiB per-TC VMEM; free on v5e/v6e)."""
    try:
        return pl.BlockSpec(shape, lambda i: (0, 0), pipeline_mode=pl.Buffered(1))
    except Exception:  # older jax without pipeline_mode / Buffered
        return pl.BlockSpec(shape, lambda i: (0, 0))


def _vmem_limit(weight_bytes, io_bytes):
    """Generation-aware scoped-VMEM limit: use most of the chip's VMEM,
    minus headroom (v5e/v6e: 128 MiB; v7x: 64 MiB per TC)."""
    try:
        cap = int(pltpu.get_tpu_info().vmem_capacity_bytes)
    except Exception:
        cap = 64 << 20  # conservative default (safe on v7x)
    headroom = 8 << 20
    want = weight_bytes + 4 * io_bytes + (4 << 20)
    return int(max(32 << 20, min(want, cap - headroom)))


def _pallas_mlp_call(kernel, y_p, padded_params, TB, Bp, Dp_in, Dp_out):
    flat = []
    in_specs = [pl.BlockSpec((TB, Dp_in), lambda i: (i, 0))]
    weight_bytes = 0
    for (w_p, b_p) in padded_params:
        flat.extend([w_p, b_p])
        # Constant index_map + Buffered(1): single resident copy across all tiles.
        in_specs.append(_resident_spec(w_p.shape))
        in_specs.append(_resident_spec(b_p.shape))
        weight_bytes += int(w_p.size) * w_p.dtype.itemsize + int(b_p.size) * 4

    io_bytes = (TB * Dp_in + TB * Dp_out) * 4

    # TODO(synk): if bf16 weights + Buffered(1) still exceed ~50 MiB (large hidden
    # dims on v7x), stream weights per layer (pltpu.emit_pipeline / extra K grid
    # axis) instead of holding the whole MLP VMEM-resident.
    # NOTE: with dimension_semantics=("parallel",) each TensorCore on v7x megacore
    # holds its OWN resident weight copy (VMEM is per-TC); weight DMA doubles there,
    # which is amortized by fused multi-step integration / large batches.
    return pl.pallas_call(
        kernel,
        out_shape=jax.ShapeDtypeStruct((Bp, Dp_out), jnp.float32),
        grid=(Bp // TB,),
        in_specs=in_specs,
        out_specs=pl.BlockSpec((TB, Dp_out), lambda i: (i, 0)),
        compiler_params=pltpu.CompilerParams(
            dimension_semantics=("parallel",),
            vmem_limit_bytes=_vmem_limit(weight_bytes, io_bytes),
        ),
    )(y_p, *flat)


def odefunc_forward(t, y, params, *, batch_tile=512, use_bf16_matmul=True):
    """One f(t, y) evaluation.  params: list of (W [in,out], b [1,out])."""
    del t  # ODEFunc.forward ignores t
    B, _ = y.shape
    D_out = params[-1][0].shape[1]
    Dp_out = _round_up(D_out, LANE)

    y_p, pp, TB, Bp, Dp_in = _pad_inputs(y, params, batch_tile, use_bf16_matmul)
    kernel = _make_mlp_kernel(len(params), use_bf16_matmul)
    out_p = _pallas_mlp_call(kernel, y_p, pp, TB, Bp, Dp_in, Dp_out)
    return out_p[:B, :D_out]


def odefunc_rk4_integrate(t, y, params, dt, num_steps=1, *,
                          batch_tile=512, use_bf16_matmul=True):
    """`num_steps` RK4 steps of y' = f(t, y) fused into ONE pallas_call:
    weights are DMA'd once per call and y never round-trips HBM between steps."""
    del t
    B, D_in = y.shape
    assert params[-1][0].shape[1] == D_in, "ODE RHS must map R^D -> R^D"
    Dp = _round_up(D_in, LANE)

    y_p, pp, TB, Bp, Dp_in = _pad_inputs(y, params, batch_tile, use_bf16_matmul)
    kernel = _make_rk4_kernel(len(params), use_bf16_matmul, float(dt), int(num_steps))
    out_p = _pallas_mlp_call(kernel, y_p, pp, TB, Bp, Dp_in, Dp)
    return out_p[:B, :D_in]


def init_odefunc_params(key, input_dim, hidden_dim, num_layers):
    """Deterministic init. Layer dims follow the PyTorch module exactly."""
    dims = [(input_dim, hidden_dim)]
    for _ in range(num_layers - 1):
        dims.append((hidden_dim, hidden_dim))
    dims.append((hidden_dim, input_dim))

    params = []
    for (fan_in, fan_out) in dims:
        key, kw, kb = jax.random.split(key, 3)
        bound = 1.0 / jnp.sqrt(fan_in)
        # W stored as [in, out] (transpose of torch's [out, in]); b as [1, out]
        w = jax.random.uniform(kw, (fan_in, fan_out), jnp.float32, -bound, bound)
        b = jax.random.uniform(kb, (1, fan_out), jnp.float32, -bound, bound)
        params.append((w, b))
    return params


def odefunc_reference(t, y, params):
    """Plain-JAX reference for sanity checking."""
    del t
    h = y
    n = len(params)
    for i, (w, b) in enumerate(params):
        h = h @ w + b
        if i == 0:
            h = jnp.tanh(h)
        elif i < n - 1:
            h = _softplus(h)
    return h


def rk4_reference(y, params, dt, num_steps):
    f = lambda h: odefunc_reference(None, h, params)
    for _ in range(num_steps):
        k1 = f(y)
        k2 = f(y + 0.5 * dt * k1)
        k3 = f(y + 0.5 * dt * k2)
        k4 = f(y + dt * k3)
        y = y + dt / 6.0 * (k1 + 2.0 * k2 + 2.0 * k3 + k4)
    return y


if __name__ == "__main__":
    input_dim, hidden_dim, num_layers = 4, 32, 3
    batch = 64

    key = jax.random.PRNGKey(0)
    key, ky = jax.random.split(key)
    y = jax.random.normal(ky, (batch, input_dim), jnp.float32)
    t = jnp.float32(0.0)  # unused, kept for interface parity
    params = init_odefunc_params(key, input_dim, hidden_dim, num_layers)

    ref = odefunc_reference(t, y, params)

    # bf16-weight MXU path (default): f32 accumulation/activations, looser tolerance.
    out = jax.block_until_ready(odefunc_forward(t, y, params))
    assert out.shape == (batch, input_dim)
    assert jnp.allclose(out, ref, atol=5e-2, rtol=5e-2), "bf16 path mismatch vs reference"

    # exact-f32 path: tight tolerance (documented accurate path for ODE work).
    out_f32 = jax.block_until_ready(odefunc_forward(t, y, params, use_bf16_matmul=False))
    assert jnp.allclose(out_f32, ref, atol=1e-5, rtol=1e-5), "f32 path mismatch vs reference"

    # fused multi-step RK4: 3 steps (12 RHS evals) share one weight DMA / dispatch.
    dt, num_steps = 0.1, 3
    step = jax.block_until_ready(odefunc_rk4_integrate(t, y, params, dt, num_steps))
    step_ref = rk4_reference(y, params, dt, num_steps)
    assert step.shape == (batch, input_dim)
    assert jnp.allclose(step, step_ref, atol=5e-2, rtol=5e-2), "fused RK4 mismatch vs reference"

    step_f32 = jax.block_until_ready(
        odefunc_rk4_integrate(t, y, params, dt, num_steps, use_bf16_matmul=False))
    assert jnp.allclose(step_f32, step_ref, atol=1e-4, rtol=1e-4), "f32 RK4 mismatch vs reference"

    print("KERNEL_OK")
</pallas_src>

<mosaic_0001>
module attributes {stable_mosaic.version = 11 : i64} {
  func.func @kernel(%arg0: i32, %arg1: memref<64x128xf32, #tpu.memory_space<vmem>>, %arg2: memref<128x128xbf16, #tpu.memory_space<vmem>>, %arg3: memref<1x128xf32, #tpu.memory_space<vmem>>, %arg4: memref<128x128xbf16, #tpu.memory_space<vmem>>, %arg5: memref<1x128xf32, #tpu.memory_space<vmem>>, %arg6: memref<128x128xbf16, #tpu.memory_space<vmem>>, %arg7: memref<1x128xf32, #tpu.memory_space<vmem>>, %arg8: memref<128x128xbf16, #tpu.memory_space<vmem>>, %arg9: memref<1x128xf32, #tpu.memory_space<vmem>>, %arg10: memref<64x128xf32, #tpu.memory_space<vmem>>) attributes {dimension_semantics = [#tpu.dimension_semantics<parallel>], iteration_bounds = array<i64: 1>, scalar_prefetch = 0 : i64, scratch_operands = 0 : i64, tpu.core_type = #tpu.core_type<tc>, window_params = [{transform_indices = @transform_0, window_bounds = array<i64: 64, 128>}, {pipeline_mode = #tpu.pipeline_mode<synchronous>, transform_indices = @transform_1, window_bounds = array<i64: 128, 128>}, {pipeline_mode = #tpu.pipeline_mode<synchronous>, transform_indices = @transform_2, window_bounds = array<i64: 1, 128>}, {pipeline_mode = #tpu.pipeline_mode<synchronous>, transform_indices = @transform_3, window_bounds = array<i64: 128, 128>}, {pipeline_mode = #tpu.pipeline_mode<synchronous>, transform_indices = @transform_4, window_bounds = array<i64: 1, 128>}, {pipeline_mode = #tpu.pipeline_mode<synchronous>, transform_indices = @transform_5, window_bounds = array<i64: 128, 128>}, {pipeline_mode = #tpu.pipeline_mode<synchronous>, transform_indices = @transform_6, window_bounds = array<i64: 1, 128>}, {pipeline_mode = #tpu.pipeline_mode<synchronous>, transform_indices = @transform_7, window_bounds = array<i64: 128, 128>}, {pipeline_mode = #tpu.pipeline_mode<synchronous>, transform_indices = @transform_8, window_bounds = array<i64: 1, 128>}, {transform_indices = @transform_9, window_bounds = array<i64: 64, 128>}]} {
    %c0 = arith.constant 0 : index
    %c0_0 = arith.constant 0 : index
    %0 = vector.load %arg1[%c0, %c0_0] : memref<64x128xf32, #tpu.memory_space<vmem>>, vector<64x128xf32>
    %c0_1 = arith.constant 0 : index
    %c0_2 = arith.constant 0 : index
    %1 = vector.load %arg2[%c0_1, %c0_2] : memref<128x128xbf16, #tpu.memory_space<vmem>>, vector<128x128xbf16>
    %c0_3 = arith.constant 0 : index
    %c0_4 = arith.constant 0 : index
    %2 = vector.load %arg3[%c0_3, %c0_4] : memref<1x128xf32, #tpu.memory_space<vmem>>, vector<1x128xf32>
    %3 = arith.truncf %0 : vector<64x128xf32> to vector<64x128xbf16>
    %cst = arith.constant dense<0.000000e+00> : vector<64x128xf32>
    %4 = tpu.matmul %3, %1, %cst {dimension_numbers = #tpu.dot_dimension_numbers<[1], [0], [0], [1], [0, 0, 1, 1], [], []>} : vector<64x128xbf16>, vector<128x128xbf16>, vector<64x128xf32> -> vector<64x128xf32>
    %5 = vector.broadcast %2 : vector<1x128xf32> to vector<64x128xf32>
    %6 = arith.addf %4, %5 : vector<64x128xf32>
    %7 = math.tanh %6 : vector<64x128xf32>
    %c0_5 = arith.constant 0 : index
    %c0_6 = arith.constant 0 : index
    %8 = vector.load %arg4[%c0_5, %c0_6] : memref<128x128xbf16, #tpu.memory_space<vmem>>, vector<128x128xbf16>
    %c0_7 = arith.constant 0 : index
    %c0_8 = arith.constant 0 : index
    %9 = vector.load %arg5[%c0_7, %c0_8] : memref<1x128xf32, #tpu.memory_space<vmem>>, vector<1x128xf32>
    %10 = arith.truncf %7 : vector<64x128xf32> to vector<64x128xbf16>
    %cst_9 = arith.constant dense<0.000000e+00> : vector<64x128xf32>
    %11 = tpu.matmul %10, %8, %cst_9 {dimension_numbers = #tpu.dot_dimension_numbers<[1], [0], [0], [1], [0, 0, 1, 1], [], []>} : vector<64x128xbf16>, vector<128x128xbf16>, vector<64x128xf32> -> vector<64x128xf32>
    %12 = vector.broadcast %9 : vector<1x128xf32> to vector<64x128xf32>
    %13 = arith.addf %11, %12 : vector<64x128xf32>
    %cst_10 = arith.constant 0.000000e+00 : f32
    %14 = vector.broadcast %cst_10 : f32 to vector<64x128xf32>
    %15 = arith.maximumf %13, %14 : vector<64x128xf32>
    %16 = math.absf %13 : vector<64x128xf32>
    %cst_11 = arith.constant 0.000000e+00 : f32
    %17 = vector.broadcast %cst_11 : f32 to vector<64x128xf32>
    %18 = arith.subf %17, %16 : vector<64x128xf32>
    %19 = math.exp %18 : vector<64x128xf32>
    %20 = math.log1p %19 : vector<64x128xf32>
    %21 = arith.addf %15, %20 : vector<64x128xf32>
    %c0_12 = arith.constant 0 : index
    %c0_13 = arith.constant 0 : index
    %22 = vector.load %arg6[%c0_12, %c0_13] : memref<128x128xbf16, #tpu.memory_space<vmem>>, vector<128x128xbf16>
    %c0_14 = arith.constant 0 : index
    %c0_15 = arith.constant 0 : index
    %23 = vector.load %arg7[%c0_14, %c0_15] : memref<1x128xf32, #tpu.memory_space<vmem>>, vector<1x128xf32>
    %24 = arith.truncf %21 : vector<64x128xf32> to vector<64x128xbf16>
    %cst_16 = arith.constant dense<0.000000e+00> : vector<64x128xf32>
    %25 = tpu.matmul %24, %22, %cst_16 {dimension_numbers = #tpu.dot_dimension_numbers<[1], [0], [0], [1], [0, 0, 1, 1], [], []>} : vector<64x128xbf16>, vector<128x128xbf16>, vector<64x128xf32> -> vector<64x128xf32>
    %26 = vector.broadcast %23 : vector<1x128xf32> to vector<64x128xf32>
    %27 = arith.addf %25, %26 : vector<64x128xf32>
    %cst_17 = arith.constant 0.000000e+00 : f32
    %28 = vector.broadcast %cst_17 : f32 to vector<64x128xf32>
    %29 = arith.maximumf %27, %28 : vector<64x128xf32>
    %30 = math.absf %27 : vector<64x128xf32>
    %cst_18 = arith.constant 0.000000e+00 : f32
    %31 = vector.broadcast %cst_18 : f32 to vector<64x128xf32>
    %32 = arith.subf %31, %30 : vector<64x128xf32>
    %33 = math.exp %32 : vector<64x128xf32>
    %34 = math.log1p %33 : vector<64x128xf32>
    %35 = arith.addf %29, %34 : vector<64x128xf32>
    %c0_19 = arith.constant 0 : index
    %c0_20 = arith.constant 0 : index
    %36 = vector.load %arg8[%c0_19, %c0_20] : memref<128x128xbf16, #tpu.memory_space<vmem>>, vector<128x128xbf16>
    %c0_21 = arith.constant 0 : index
    %c0_22 = arith.constant 0 : index
    %37 = vector.load %arg9[%c0_21, %c0_22] : memref<1x128xf32, #tpu.memory_space<vmem>>, vector<1x128xf32>
    %38 = arith.truncf %35 : vector<64x128xf32> to vector<64x128xbf16>
    %cst_23 = arith.constant dense<0.000000e+00> : vector<64x128xf32>
    %39 = tpu.matmul %38, %36, %cst_23 {dimension_numbers = #tpu.dot_dimension_numbers<[1], [0], [0], [1], [0, 0, 1, 1], [], []>} : vector<64x128xbf16>, vector<128x128xbf16>, vector<64x128xf32> -> vector<64x128xf32>
    %40 = vector.broadcast %37 : vector<1x128xf32> to vector<64x128xf32>
    %41 = arith.addf %39, %40 : vector<64x128xf32>
    %c0_24 = arith.constant 0 : index
    %c0_25 = arith.constant 0 : index
    %42 = vector.load %arg10[%c0_24, %c0_25] : memref<64x128xf32, #tpu.memory_space<vmem>>, vector<64x128xf32>
    tpu.vector_store %arg10[%c0_24, %c0_25], %41 {strides = array<i32>} : memref<64x128xf32, #tpu.memory_space<vmem>>, vector<64x128xf32>,
    return
  }
  func.func @transform_0(%arg0: i32) -> (i32, i32) {
    %c0_i32 = arith.constant 0 : i32
    %c0_i32_0 = arith.constant 0 : i32
    return %arg0, %c0_i32 : i32, i32
  }
  func.func @transform_1(%arg0: i32) -> (i32, i32) {
    %c0_i32 = arith.constant 0 : i32
    %c0_i32_0 = arith.constant 0 : i32
    %c0_i32_1 = arith.constant 0 : i32
    return %c0_i32, %c0_i32_0 : i32, i32
  }
  func.func @transform_2(%arg0: i32) -> (i32, i32) {
    %c0_i32 = arith.constant 0 : i32
    %c0_i32_0 = arith.constant 0 : i32
    %c0_i32_1 = arith.constant 0 : i32
    return %c0_i32, %c0_i32_0 : i32, i32
  }
  func.func @transform_3(%arg0: i32) -> (i32, i32) {
    %c0_i32 = arith.constant 0 : i32
    %c0_i32_0 = arith.constant 0 : i32
    %c0_i32_1 = arith.constant 0 : i32
    return %c0_i32, %c0_i32_0 : i32, i32
  }
  func.func @transform_4(%arg0: i32) -> (i32, i32) {
    %c0_i32 = arith.constant 0 : i32
    %c0_i32_0 = arith.constant 0 : i32
    %c0_i32_1 = arith.constant 0 : i32
    return %c0_i32, %c0_i32_0 : i32, i32
  }
  func.func @transform_5(%arg0: i32) -> (i32, i32) {
    %c0_i32 = arith.constant 0 : i32
    %c0_i32_0 = arith.constant 0 : i32
    %c0_i32_1 = arith.constant 0 : i32
    return %c0_i32, %c0_i32_0 : i32, i32
  }
  func.func @transform_6(%arg0: i32) -> (i32, i32) {
    %c0_i32 = arith.constant 0 : i32
    %c0_i32_0 = arith.constant 0 : i32
    %c0_i32_1 = arith.constant 0 : i32
    return %c0_i32, %c0_i32_0 : i32, i32
  }
  func.func @transform_7(%arg0: i32) -> (i32, i32) {
    %c0_i32 = arith.constant 0 : i32
    %c0_i32_0 = arith.constant 0 : i32
    %c0_i32_1 = arith.constant 0 : i32
    return %c0_i32, %c0_i32_0 : i32, i32
  }
  func.func @transform_8(%arg0: i32) -> (i32, i32) {
    %c0_i32 = arith.constant 0 : i32
    %c0_i32_0 = arith.constant 0 : i32
    %c0_i32_1 = arith.constant 0 : i32
    return %c0_i32, %c0_i32_0 : i32, i32
  }
  func.func @transform_9(%arg0: i32) -> (i32, i32) {
    %c0_i32 = arith.constant 0 : i32
    %c0_i32_0 = arith.constant 0 : i32
    return %arg0, %c0_i32 : i32, i32
  }
}

</mosaic_0001>

<bundles_post_ra>
// kernel: tpu_custom_call.1
= control target key start
LH: loop header
LB: loop body
LE: loop exit
PB: predicated region body
PF: predicated region fallthrough
CT: control target
= control target key end

     0   :  { %14 = vsyncpa [#allocation3], 0  ;;  %s1697_s0 = inlined_call_operand.hbm [shape: f32[64,128], index: 0, kind: input, shape index: {}]   ;;  %s1698_s1 = inlined_call_operand.hbm [shape: bf16[128,128], index: 1, kind: input, shape index: {}]   ;;  %s1699_s2 = inlined_call_operand.vmem [shape: f32[1,128], index: 2, kind: input, shape index: {}]   ;;  %s1700_s3 = inlined_call_operand.hbm [shape: bf16[128,128], index: 3, kind: input, shape index: {}]   ;;  %s1701_s4 = inlined_call_operand.vmem [shape: f32[1,128], index: 4, kind: input, shape index: {}]   ;;  %s1702_s5 = inlined_call_operand.hbm [shape: bf16[128,128], index: 5, kind: input, shape index: {}]   ;;  %s1703_s6 = inlined_call_operand.vmem [shape: f32[1,128], index: 6, kind: input, shape index: {}]   ;;  %s1704_s7 = inlined_call_operand.hbm [shape: bf16[128,128], index: 7, kind: input, shape index: {}]   ;;  %s1705_s8 = inlined_call_operand.vmem [shape: f32[1,128], index: 8, kind: input, shape index: {}]   ;;  %s1706_s9 = inlined_call_operand.hbm [shape: f32[64,128], index: 9, kind: output, shape index: {}]  }
   0x1   :  { %15 = vsyncpa [#allocation6], 0 }
   0x2   :  { %16 = vsyncpa [#allocation9], 0 }
   0x3   :  { %17 = vsyncpa [#allocation4], 0  ;;  %s1387_s30 = smov [#allocation5]   ;;  %s1247_s13 = scalar_lea.hbm %s1698_s1, 1024 }
   0x4   :  { %s35_s10 = sshll.u32 %s1387_s30, 4  ;;  %p1248_p0 = scmp.ne.s32.totalorder %s1698_s1, %s1247_s13  ;;  %s36_s10 = int_to_ptr.vmem [resolvable:$true] %s35_s10 }
   0x5   :  { %p1251_p1 = scmp.lt.u32.totalorder %s1247_s13, %s1698_s1 }
   0x7   :  { %p1253_p2 = pnand %p1251_p1, %p1248_p0 }
   0x9   :  { %1256 = shalt.err (!%p1253_p2)
}
   0xa   :  { %s1257_s18 = scalar_lea.vmem %s36_s10, 1024  ;;  %p1262_p4 = scmp.lt.s32.totalorder %s36_s10, %s36_s10 }
   0xb   :  { %p1258_p3 = scmp.ne.s32.totalorder %s36_s10, %s1257_s18  ;;  %p1263_p5 = scmp.lt.s32.totalorder %s1257_s18, %s1257_s18 }
   0xd   :  { %p1264_p6 = por %p1263_p5, %p1262_p4 }
   0xf   :  { %p1265_p7 = pnand %p1264_p6, %p1258_p3 }
  0x11   :  { %1268 = shalt.err (!%p1265_p7)
}
  0x12   :  { %s1388_s19 = smov 64   ;;  %s1389_s20 = smov 4  }
  0x13   :  { %41 = dma.hbm_to_vmem [thread:$0]  %s1698_s1, 1024, %s36_s10, [#allocation6], %s1388_s19, %s1388_s19, %s1389_s20  }
  0x14   :  { %s1390_s23 = smov [#allocation8]   ;;  %s1391_s25 = smov [#allocation2]  }
  0x15   :  { %s63_s24 = sshll.u32 %s1390_s23, 4  ;;  %s23_s26 = sshll.u32 %s1391_s25, 4  ;;  %s64_s24 = int_to_ptr.vmem [resolvable:$true] %s63_s24  ;;  %s24_s26 = int_to_ptr.vmem [resolvable:$true] %s23_s26 }
  0x16   :  { %s1269_s29 = scalar_lea.hbm %s1702_s5, 1024 }
  0x17   :  { %p1270_p8 = scmp.ne.s32.totalorder %s1702_s5, %s1269_s29  ;;  %p1273_p9 = scmp.lt.u32.totalorder %s1269_s29, %s1702_s5 }
  0x19   :  { %p1275_p10 = pnand %p1273_p9, %p1270_p8 }
  0x1b   :  { %1278 = shalt.err (!%p1275_p10)
}
  0x1c   :  { %s1279_s1 = scalar_lea.vmem %s64_s24, 1024  ;;  %p1284_p12 = scmp.lt.s32.totalorder %s64_s24, %s64_s24 }
  0x1d   :  { %p1280_p11 = scmp.ne.s32.totalorder %s64_s24, %s1279_s1  ;;  %p1285_p13 = scmp.lt.s32.totalorder %s1279_s1, %s1279_s1 }
  0x1f   :  { %p1286_p0 = por %p1285_p13, %p1284_p12 }
  0x21   :  { %p1287_p1 = pnand %p1286_p0, %p1280_p11 }
  0x23   :  { %1290 = shalt.err (!%p1287_p1)
}
  0x24   :  { %69 = dma.hbm_to_vmem [thread:$0]  %s1702_s5, 1024, %s64_s24, [#allocation9], %s1388_s19, %s1388_s19, %s1389_s20  }
  0x25   :  { %s1291_s17 = scalar_lea.hbm %s1697_s0, 1024 }
  0x26   :  { %p1292_p2 = scmp.ne.s32.totalorder %s1697_s0, %s1291_s17  ;;  %p1295_p3 = scmp.lt.u32.totalorder %s1291_s17, %s1697_s0 }
  0x28   :  { %p1297_p4 = pnand %p1295_p3, %p1292_p2 }
  0x2a   :  { %1300 = shalt.err (!%p1297_p4)
}
  0x2b   :  { %s1301_s25 = scalar_lea.vmem %s24_s26, 1024  ;;  %p1306_p6 = scmp.lt.s32.totalorder %s24_s26, %s24_s26 }
  0x2c   :  { %p1302_p5 = scmp.ne.s32.totalorder %s24_s26, %s1301_s25  ;;  %p1307_p7 = scmp.lt.s32.totalorder %s1301_s25, %s1301_s25 }
  0x2e   :  { %p1308_p8 = por %p1307_p7, %p1306_p6 }
  0x30   :  { %p1309_p9 = pnand %p1308_p8, %p1302_p5 }
  0x32   :  { %1312 = shalt.err (!%p1309_p9)
}
  0x33   :  { %s1392_s5 = smov 128   ;;  %s1393_s24 = smov 8  }
  0x34   :  { %29 = dma.hbm_to_vmem [thread:$0]  %s1697_s0, 1024, %s24_s26, [#allocation3], %s1392_s5, %s1392_s5, %s1393_s24  }
  0x35   :  { %s1394_s29 = smov [#allocation7]   ;;  %s1395_s11 = smov [#allocation10]  }
  0x36   :  { %s49_s30 = sshll.u32 %s1394_s29, 4  ;;  %s77_s12 = sshll.u32 %s1395_s11, 4  ;;  %s50_s30 = int_to_ptr.vmem [resolvable:$true] %s49_s30  ;;  %s78_s12 = int_to_ptr.vmem [resolvable:$true] %s77_s12 }
  0x37   :  { %s1313_s10 = scalar_lea.hbm %s1700_s3, 1024 }
  0x38   :  { %p1314_p10 = scmp.ne.s32.totalorder %s1700_s3, %s1313_s10  ;;  %p1317_p11 = scmp.lt.u32.totalorder %s1313_s10, %s1700_s3 }
  0x3a   :  { %p1319_p12 = pnand %p1317_p11, %p1314_p10 }
  0x3c   :  { %1322 = shalt.err (!%p1319_p12)
}
  0x3d   :  { %s1323_s0 = scalar_lea.vmem %s50_s30, 1024  ;;  %p1328_p0 = scmp.lt.s32.totalorder %s50_s30, %s50_s30 }
  0x3e   :  { %p1324_p13 = scmp.ne.s32.totalorder %s50_s30, %s1323_s0  ;;  %p1329_p1 = scmp.lt.s32.totalorder %s1323_s0, %s1323_s0 }
  0x40   :  { %p1330_p2 = por %p1329_p1, %p1328_p0 }
  0x42   :  { %p1331_p3 = pnand %p1330_p2, %p1324_p13 }
  0x44   :  { %1334 = shalt.err (!%p1331_p3)
}
  0x45   :  { %55 = dma.hbm_to_vmem [thread:$0]  %s1700_s3, 1024, %s50_s30, [#allocation6], %s1388_s19, %s1388_s19, %s1389_s20  }
  0x46   :  { %s1335_s23 = scalar_lea.hbm %s1704_s7, 1024 }
  0x47   :  { %p1336_p4 = scmp.ne.s32.totalorder %s1704_s7, %s1335_s23  ;;  %p1339_p5 = scmp.lt.u32.totalorder %s1335_s23, %s1704_s7 }
  0x49   :  { %p1341_p6 = pnand %p1339_p5, %p1336_p4 }
  0x4b   :  { %1344 = shalt.err (!%p1341_p6)
}
  0x4c   :  { %s1345_s11 = scalar_lea.vmem %s78_s12, 1024  ;;  %p1350_p8 = scmp.lt.s32.totalorder %s78_s12, %s78_s12 }
  0x4d   :  { %p1346_p7 = scmp.ne.s32.totalorder %s78_s12, %s1345_s11  ;;  %p1351_p9 = scmp.lt.s32.totalorder %s1345_s11, %s1345_s11 }
  0x4f   :  { %p1352_p10 = por %p1351_p9, %p1350_p8 }
  0x51   :  { %p1353_p11 = pnand %p1352_p10, %p1346_p7 }
  0x53   :  { %1356 = shalt.err (!%p1353_p11)
}
  0x54   :  { %83 = dma.hbm_to_vmem [thread:$0]  %s1704_s7, 1024, %s78_s12, [#allocation9], %s1388_s19, %s1388_s19, %s1389_s20  }
  0x55   :  { %1379 = dma.done.wait [#allocation3], 1024  }
  0x56   :  { %1380 = vsyncadd [#allocation3], 4294966272 }
  0x57   :  { %1381 = dma.done.wait [#allocation6], 2048  }
  0x58   :  { %1382 = vsyncadd [#allocation6], 4294965248 }
  0x59   :  { %1383 = dma.done.wait [#allocation9], 2048  }
  0x5a   :  { %1384 = vsyncadd [#allocation9], 4294965248  ;;  %v1135_v0 = vld [vmem:[#allocation5] sm:$0xff]   ;;  %v1136_v1 = vld [vmem:[#allocation5 + $0x8] sm:$0xff]   ;;  %s1396_s1 = smov [#allocation11]  }
  0x5b   :  { %1029 = vmatprep.subr.bf16.mxu0 %v1135_v0  ;;  %v1137_v2 = vld [vmem:[#allocation5 + $0x10] sm:$0xff]   ;;  %v1138_v3 = vld [vmem:[#allocation5 + $0x18] sm:$0xff]   ;;  %v102_v4 = vld [vmem:[#allocation2] sm:$0xff]  ;;  %s931_s10 = sshll.u32 %s1396_s1, 4  ;;  %s932_s10 = int_to_ptr.vmem [resolvable:$true] %s931_s10 }
  0x5c   :  { %1030 = vmatpush3.bf16.msra.mxu0 %v1135_v0  ;;  %v103_v5 = vld [vmem:[#allocation2 + $0x8] sm:$0xff]  ;;  %v1139_v7 = vld [vmem:[#allocation5 + $0x20] sm:$0xff]   ;;  %v1145_v10 = vld [vmem:[#allocation7 + $0x10] sm:$0xff]   ;;  %p1362_p13 = scmp.lt.s32.totalorder %s932_s10, %s932_s10 }
  0x5d   :  { %1031 = vmatprep.subr.bf16.mxu0 %v1136_v1  ;;  %v127_v6 = vpack.c.bf16 %v103_v5, %v102_v4  ;;  %v1143_v8 = vld [vmem:[#allocation7] sm:$0xff]   ;;  %v1144_v9 = vld [vmem:[#allocation7 + $0x8] sm:$0xff]   ;;  %v1141_v12 = vld [vmem:[#allocation5 + $0x30] sm:$0xff]  }
  0x5e   :  { %1053 = vmatprep.subr.bf16.mxu1 %v1143_v8  ;;  %v1140_v11 = vld [vmem:[#allocation5 + $0x28] sm:$0xff]   ;;  %v1142_v13 = vld [vmem:[#allocation5 + $0x38] sm:$0xff]   ;;  %v104_v14 = vld [vmem:[#allocation2 + $0x10] sm:$0xff] }
  0x5f   :  { %1045 = vmatprep.mubr.bf16.mxu0 %v127_v6  ;;  %1054 = vmatpush3.bf16.msra.mxu1 %v1143_v8  ;;  %v105_v15 = vld [vmem:[#allocation2 + $0x18] sm:$0xff]  ;;  %v106_v16 = vld [vmem:[#allocation2 + $0x20] sm:$0xff]  ;;  %v107_v17 = vld [vmem:[#allocation2 + $0x28] sm:$0xff] }
  0x60   :  { %1032 = vmatpush3.bf16.msra.mxu0 %v1136_v1  ;;  %1055 = vmatprep.subr.bf16.mxu1 %v1144_v9  ;;  %v128_v18 = vpack.c.bf16 %v105_v15, %v104_v14  ;;  %v129_v19 = vpack.c.bf16 %v107_v17, %v106_v16  ;;  %v108_v20 = vld [vmem:[#allocation2 + $0x30] sm:$0xff]  ;;  %v109_v21 = vld [vmem:[#allocation2 + $0x38] sm:$0xff]  ;;  %v1147_v24 = vld [vmem:[#allocation7 + $0x20] sm:$0xff]  }
  0x61   :  { %1033 = vmatprep.subr.bf16.mxu0 %v1137_v2  ;;  %v130_v22 = vpack.c.bf16 %v109_v21, %v108_v20  ;;  %v1146_v23 = vld [vmem:[#allocation7 + $0x18] sm:$0xff]   ;;  %v1148_v25 = vld [vmem:[#allocation7 + $0x28] sm:$0xff]   ;;  %v1149_v26 = vld [vmem:[#allocation7 + $0x30] sm:$0xff]  }
  0x62   :  { %v1150_v27 = vld [vmem:[#allocation7 + $0x38] sm:$0xff]   ;;  %v945_v28 = vld [vmem:[%s1699_s2] ss:$0 sm:$0xff]  ;;  %v1152_v58 = vld [vmem:[#allocation8 + $0x8] sm:$0xff]  }
  0x63   :  { %1056 = vmatpush3.bf16.msra.mxu1 %v1144_v9  ;;  %v1151_v57 = vld [vmem:[#allocation8] sm:$0xff]   ;;  %v1153_v59 = vld [vmem:[#allocation8 + $0x10] sm:$0xff]   ;;  %v1154_v60 = vld [vmem:[#allocation8 + $0x18] sm:$0xff]  }
  0x64   :  { %1034 = vmatpush3.bf16.msra.mxu0 %v1137_v2  ;;  %1057 = vmatprep.subr.bf16.mxu1 %v1145_v10  ;;  %v1155_v61 = vld [vmem:[#allocation8 + $0x20] sm:$0xff]   ;;  %v1156_v62 = vld [vmem:[#allocation8 + $0x28] sm:$0xff]   ;;  %v1157_v63 = vld [vmem:[#allocation8 + $0x30] sm:$0xff]  }
  0x65   :  { %1035 = vmatprep.subr.bf16.mxu0 %v1138_v3  ;;  %v1158_v0 = vld [vmem:[#allocation8 + $0x38] sm:$0xff]   ;;  %v954_v1 = vld [vmem:[%s1701_s4] ss:$0 sm:$0xff] }
  0x67   :  { %1058 = vmatpush3.bf16.msra.mxu1 %v1145_v10 }
  0x68   :  { %1036 = vmatpush3.bf16.msra.mxu0 %v1138_v3  ;;  %1059 = vmatprep.subr.bf16.mxu1 %v1146_v23 }
  0x69   :  { %1037 = vmatprep.subr.bf16.mxu0 %v1139_v7 }
  0x6b   :  { %1060 = vmatpush3.bf16.msra.mxu1 %v1146_v23 }
  0x6c   :  { %1038 = vmatpush3.bf16.msra.mxu0 %v1139_v7  ;;  %1061 = vmatprep.subr.bf16.mxu1 %v1147_v24 }
  0x6d   :  { %1039 = vmatprep.subr.bf16.mxu0 %v1140_v11 }
  0x6f   :  { %1062 = vmatpush3.bf16.msra.mxu1 %v1147_v24 }
  0x70   :  { %1040 = vmatpush3.bf16.msra.mxu0 %v1140_v11  ;;  %1063 = vmatprep.subr.bf16.mxu1 %v1148_v25 }
  0x71   :  { %1041 = vmatprep.subr.bf16.mxu0 %v1141_v12 }
  0x73   :  { %1064 = vmatpush3.bf16.msra.mxu1 %v1148_v25 }
  0x74   :  { %1042 = vmatpush3.bf16.msra.mxu0 %v1141_v12  ;;  %1065 = vmatprep.subr.bf16.mxu1 %v1149_v26 }
  0x75   :  { %1043 = vmatprep.subr.bf16.mxu0 %v1142_v13 }
  0x77   :  { %1066 = vmatpush3.bf16.msra.mxu1 %v1149_v26 }
  0x78   :  { %1044 = vmatpush3.bf16.msra.mxu0 %v1142_v13  ;;  %1067 = vmatprep.subr.bf16.mxu1 %v1150_v27 }
  0x79   :  { %1077 = vmatprep.subr.bf16.mxu0 %v1151_v57 }
  0x7b   :  { %1046 = vmatmul.mubr.bf16.vlgmr.msra.gmra.mrb[0].mxu0 %v128_v18  ;;  %1068 = vmatpush3.bf16.msra.mxu1 %v1150_v27 }
  0x7c   :  { %1049 = vmatprep.mubr.bf16.mxu0 %v129_v19  ;;  %1078 = vmatpush3.bf16.msra.mxu0 %v1151_v57 }
  0x7d   :  { %1079 = vmatprep.subr.bf16.mxu0 %v1152_v58 }
  0x80   :  { %1080 = vmatpush3.bf16.msra.mxu0 %v1152_v58 }
  0x81   :  { %1081 = vmatprep.subr.bf16.mxu0 %v1153_v59 }
  0x83   :  { %1050 = vmatmul.mubr.bf16.gmra.mrb[4].mxu0 %v130_v22 }
  0x84   :  { %1082 = vmatpush3.bf16.msra.mxu0 %v1153_v59 }
  0x85   :  { %1083 = vmatprep.subr.bf16.mxu0 %v1154_v60 }
  0x88   :  { %1084 = vmatpush3.bf16.msra.mxu0 %v1154_v60 }
  0x89   :  { %1085 = vmatprep.subr.bf16.mxu0 %v1155_v61 }
  0x8c   :  { %1086 = vmatpush3.bf16.msra.mxu0 %v1155_v61 }
  0x8d   :  { %1087 = vmatprep.subr.bf16.mxu0 %v1156_v62 }
  0x90   :  { %1088 = vmatpush3.bf16.msra.mxu0 %v1156_v62 }
  0x91   :  { %1089 = vmatprep.subr.bf16.mxu0 %v1157_v63 }
  0x94   :  { %1090 = vmatpush3.bf16.msra.mxu0 %v1157_v63 }
  0x95   :  { %1091 = vmatprep.subr.bf16.mxu0 %v1158_v0 }
  0x98   :  { %1092 = vmatpush3.bf16.msra.mxu0 %v1158_v0 }
 0x14e   :  { %v1047_v29 = vpop.f32.mrb[0].mxu0 }
 0x14f   :  { %v228_v30 = vadd.f32 %v1047_v29, %v945_v28  ;;  %v219_v31 = vpop.f32.mrb[1].mxu0 }
 0x150   :  { %v220_v32 = vadd.f32 %v945_v28, %v219_v31  ;;  %v1048_v33 = vpop.f32.mrb[2].mxu0 }
 0x151   :  { %1167 = vtanh.f32 %v228_v30  ;;  %v231_v34 = vadd.f32 %v1048_v33, %v945_v28  ;;  %v222_v35 = vpop.f32.mrb[3].mxu0 }
 0x152   :  { %1169 = vtanh.f32 %v220_v32  ;;  %v223_v36 = vadd.f32 %v945_v28, %v222_v35 }
 0x153   :  { %1171 = vtanh.f32 %v231_v34 }
 0x154   :  { %1173 = vtanh.f32 %v223_v36 }
 0x156   :  { %v1051_v37 = vpop.f32.mrb[4].mxu0 }
 0x157   :  { %v244_v38 = vadd.f32 %v1051_v37, %v945_v28  ;;  %v235_v39 = vpop.f32.mrb[5].mxu0 }
 0x158   :  { %v236_v40 = vadd.f32 %v945_v28, %v235_v39  ;;  %v1052_v41 = vpop.f32.mrb[6].mxu0 }
 0x159   :  { %1175 = vtanh.f32 %v244_v38  ;;  %v247_v42 = vadd.f32 %v1052_v41, %v945_v28  ;;  %v238_v43 = vpop.f32.mrb[7].mxu0 }
 0x15a   :  { %1177 = vtanh.f32 %v236_v40  ;;  %v239_v44 = vadd.f32 %v945_v28, %v238_v43 }
 0x15b   :  { %v1168_v45 = vpop.eup %1167  ;;  %1179 = vtanh.f32 %v247_v42 }
 0x15c   :  { %v1170_v46 = vpop.eup %1169  ;;  %1181 = vtanh.f32 %v239_v44 }
 0x15d   :  { %v1172_v47 = vpop.eup %1171 }
 0x15e   :  { %v1174_v48 = vpop.eup %1173  ;;  %v276_v49 = vpack.c.bf16 %v1172_v47, %v1168_v45 }
 0x15f   :  { %v275_v50 = vpack.c.bf16 %v1174_v48, %v1170_v46 }
 0x161   :  { %1069 = vmatprep.mubr.bf16.mxu1 %v275_v50 }
 0x162   :  { %1070 = vmatmul.mubr.bf16.vlgmr.msra.gmra.mrb[0].mxu1 %v276_v49 }
 0x163   :  { %v1176_v51 = vpop.eup %1175 }
 0x164   :  { %v1178_v52 = vpop.eup %1177 }
 0x165   :  { %v1180_v53 = vpop.eup %1179 }
 0x166   :  { %v1182_v54 = vpop.eup %1181  ;;  %v278_v55 = vpack.c.bf16 %v1180_v53, %v1176_v51 }
 0x167   :  { %v277_v56 = vpack.c.bf16 %v1182_v54, %v1178_v52 }
 0x169   :  { %1073 = vmatprep.mubr.bf16.mxu1 %v277_v56 }
 0x16a   :  { %1074 = vmatmul.mubr.bf16.gmra.mrb[4].mxu1 %v278_v55 }
 0x235   :  { %v1071_v2 = vpop.f32.mrb[0].mxu1 }
 0x236   :  { %v1528_v3 = vadd.f32 %v1071_v2, %v954_v1  ;;  %v367_v4 = vpop.f32.mrb[1].mxu1 }
 0x237   :  { %v1530_v5 = vadd.f32 %v954_v1, %v367_v4  ;;  %v1072_v6 = vpop.f32.mrb[2].mxu1 }
 0x238   :  { %v408_v7 = vand.u32 2147483647, %v1528_v3  ;;  %v1533_v8 = vadd.f32 %v1072_v6, %v954_v1  ;;  %v370_v9 = vpop.f32.mrb[3].mxu1  ;;  %v400_v55 = vmax.f32 %v1528_v3, 0.0 }
 0x239   :  { %v406_v10 = vand.u32 2147483647, %v1530_v5  ;;  %v1536_v11 = vadd.f32 %v954_v1, %v370_v9  ;;  %v398_v56 = vmax.f32 %v1530_v5, 0.0 }
 0x23a   :  { %v416_v12 = vsub.f32 0.0, %v408_v7  ;;  %v409_v13 = vand.u32 2147483647, %v1533_v8 }
 0x23b   :  { %v414_v14 = vsub.f32 0.0, %v406_v10  ;;  %v407_v15 = vand.u32 2147483647, %v1536_v11  ;;  %v399_v6 = vmax.f32 %v1536_v11, 0.0 }
 0x23c   :  { %v426_v16 = vmul.f32 1.442695, %v416_v12  ;;  %v417_v17 = vsub.f32 0.0, %v409_v13 }
 0x23d   :  { %v422_v18 = vmul.f32 1.442695, %v414_v14  ;;  %v415_v19 = vsub.f32 0.0, %v407_v15  ;;  %v1075_v20 = vpop.f32.mrb[4].mxu1 }
 0x23e   :  { %1183 = vpow2.f32 %v426_v16  ;;  %v428_v21 = vmul.f32 1.442695, %v417_v17  ;;  %v1540_v22 = vadd.f32 %v1075_v20, %v954_v1  ;;  %v383_v23 = vpop.f32.mrb[5].mxu1 }
 0x23f   :  { %1185 = vpow2.f32 %v422_v18  ;;  %v424_v24 = vmul.f32 1.442695, %v415_v19  ;;  %v1542_v25 = vadd.f32 %v954_v1, %v383_v23  ;;  %v1076_v26 = vpop.f32.mrb[6].mxu1 }
 0x240   :  { %1187 = vpow2.f32 %v428_v21  ;;  %v412_v27 = vand.u32 2147483647, %v1540_v22  ;;  %v1545_v28 = vadd.f32 %v1076_v26, %v954_v1  ;;  %v386_v29 = vpop.f32.mrb[7].mxu1 }
 0x241   :  { %1189 = vpow2.f32 %v424_v24  ;;  %v410_v30 = vand.u32 2147483647, %v1542_v25  ;;  %v1548_v31 = vadd.f32 %v954_v1, %v386_v29  ;;  %v401_v1 = vmax.f32 %v1533_v8, 0.0  ;;  %v1164_v8 = vld [vmem:[#allocation10 + $0x28] sm:$0xff]  }
 0x242   :  { %v420_v32 = vsub.f32 0.0, %v412_v27  ;;  %v413_v33 = vand.u32 2147483647, %v1545_v28 }
 0x243   :  { %v418_v34 = vsub.f32 0.0, %v410_v30  ;;  %v411_v35 = vand.u32 2147483647, %v1548_v31 }
 0x244   :  { %v434_v36 = vmul.f32 1.442695, %v420_v32  ;;  %v421_v37 = vsub.f32 0.0, %v413_v33 }
 0x245   :  { %v430_v38 = vmul.f32 1.442695, %v418_v34  ;;  %v419_v39 = vsub.f32 0.0, %v411_v35 }
 0x246   :  { %1191 = vpow2.f32 %v434_v36  ;;  %v436_v40 = vmul.f32 1.442695, %v421_v37 }
 0x247   :  { %1193 = vpow2.f32 %v430_v38  ;;  %v432_v41 = vmul.f32 1.442695, %v419_v39 }
 0x248   :  { %v1184_v42 = vpop.eup %1183  ;;  %1195 = vpow2.f32 %v436_v40 }
 0x249   :  { %v1186_v43 = vpop.eup %1185  ;;  %v456_v44 = vadd.f32 1.0, %v1184_v42  ;;  %1197 = vpow2.f32 %v432_v41  ;;  %v459_v50 = vmul.f32 -0.5, %v1184_v42  ;;  %v462_v61 = vand.u32 2147483647, %v1184_v42 }
 0x24a   :  { %v1188_v45 = vpop.eup %1187  ;;  %v438_v46 = vadd.f32 1.0, %v1186_v43  ;;  %v441_v51 = vmul.f32 -0.5, %v1186_v43  ;;  %v444_v4 = vand.u32 2147483647, %v1186_v43 }
 0x24b   :  { %v1190_v47 = vpop.eup %1189  ;;  %1199 = vlog2.f32 %v456_v44  ;;  %v465_v48 = vadd.f32 1.0, %v1188_v45  ;;  %v468_v52 = vmul.f32 -0.5, %v1188_v45  ;;  %v460_v60 = vadd.f32 1.0, %v459_v50 }
 0x24c   :  { %1201 = vlog2.f32 %v438_v46  ;;  %v447_v49 = vadd.f32 1.0, %v1190_v47  ;;  %v450_v57 = vmul.f32 -0.5, %v1190_v47  ;;  %v442_v62 = vadd.f32 1.0, %v441_v51 }
 0x24d   :  { %1203 = vlog2.f32 %v465_v48  ;;  %v469_v2 = vadd.f32 1.0, %v468_v52  ;;  %v471_v5 = vand.u32 2147483647, %v1188_v45  ;;  %v461_v15 = vmul.f32 %v1184_v42, %v460_v60 }
 0x24e   :  { %1205 = vlog2.f32 %v447_v49  ;;  %v451_v9 = vadd.f32 1.0, %v450_v57  ;;  %vm1569_vm0 = vcmp.lt.f32.partialorder %v462_v61, 0.0004427343  ;;  %v443_v16 = vmul.f32 %v1186_v43, %v442_v62 }
 0x24f   :  { %v470_v19 = vmul.f32 %v1188_v45, %v469_v2  ;;  %v453_v11 = vand.u32 2147483647, %v1190_v47  ;;  %vm1577_vm1 = vcmp.lt.f32.partialorder %v444_v4, 0.0004427343  ;;  %vm472_vm2 = vcmp.lt.f32.partialorder %v471_v5, 0.0004427343 }
 0x250   :  { %v1552_v53 = vpop.eup %1191  ;;  %v452_v29 = vmul.f32 %v1190_v47, %v451_v9  ;;  %v404_v49 = vmax.f32 %v1540_v22, 0.0  ;;  %v405_v2 = vmax.f32 %v1545_v28, 0.0  ;;  %v1159_v28 = vld [vmem:[#allocation10] sm:$0xff]  }
 0x251   :  { %v1554_v54 = vpop.eup %1193  ;;  %v492_v58 = vadd.f32 1.0, %v1552_v53  ;;  %v495_v10 = vmul.f32 -0.5, %v1552_v53  ;;  %vm454_vm3 = vcmp.lt.f32.partialorder %v453_v11, 0.0004427343  ;;  %v498_v38 = vand.u32 2147483647, %v1552_v53  ;;  %1101 = vmatprep.subr.bf16.mxu1 %v1159_v28 }
 0x252   :  { %v1559_v59 = vpop.eup %1195  ;;  %v474_v63 = vadd.f32 1.0, %v1554_v54  ;;  %v477_v23 = vmul.f32 -0.5, %v1554_v54  ;;  %v480_v41 = vand.u32 2147483647, %v1554_v54  ;;  %1102 = vmatpush3.bf16.msra.mxu1 %v1159_v28 }
 0x253   :  { %v1562_v0 = vpop.eup %1197  ;;  %1207 = vlog2.f32 %v492_v58  ;;  %v501_v3 = vadd.f32 1.0, %v1559_v59  ;;  %v504_v24 = vmul.f32 -0.5, %v1559_v59  ;;  %v496_v30 = vadd.f32 1.0, %v495_v10 }
 0x254   :  { %1209 = vlog2.f32 %v474_v63  ;;  %v483_v12 = vadd.f32 1.0, %v1562_v0  ;;  %v486_v35 = vmul.f32 -0.5, %v1562_v0  ;;  %v478_v40 = vadd.f32 1.0, %v477_v23 }
 0x255   :  { %v1200_v7 = vpop.eup %1199  ;;  %1211 = vlog2.f32 %v501_v3  ;;  %v505_v42 = vadd.f32 1.0, %v504_v24  ;;  %v507_v47 = vand.u32 2147483647, %v1559_v59  ;;  %v497_v51 = vmul.f32 %v1552_v53, %v496_v30 }
 0x256   :  { %v1202_v13 = vpop.eup %1201  ;;  %v458_v14 = vmul.f32 0.6931472, %v1200_v7  ;;  %1213 = vlog2.f32 %v483_v12  ;;  %v487_v52 = vadd.f32 1.0, %v486_v35  ;;  %vm1589_vm4 = vcmp.lt.f32.partialorder %v498_v38, 0.0004427343 }
 0x257   :  { %v1204_v17 = vpop.eup %1203  ;;  %v440_v18 = vmul.f32 0.6931472, %v1202_v13  ;;  %v489_v60 = vand.u32 2147483647, %v1562_v0  ;;  %v479_v62 = vmul.f32 %v1554_v54, %v478_v40  ;;  %v506_v22 = vmul.f32 %v1559_v59, %v505_v42 }
 0x258   :  { %v464_v20 = vsel %vm1569_vm0, %v461_v15, %v458_v14  ;;  %v467_v21 = vmul.f32 0.6931472, %v1204_v17  ;;  %v1206_v26 = vpop.eup %1205  ;;  %v402_v53 = vmax.f32 %v1542_v25, 0.0  ;;  %vm481_vm5 = vcmp.lt.f32.partialorder %v480_v41, 0.0004427343  ;;  %v1160_v14 = vld [vmem:[#allocation10 + $0x8] sm:$0xff]  }
 0x259   :  { %v446_v32 = vsel %vm1577_vm1, %v443_v16, %v440_v18  ;;  %v449_v34 = vmul.f32 0.6931472, %v1206_v26  ;;  %v512_v36 = vadd.f32 %v464_v20, %v400_v55  ;;  %vm508_vm6 = vcmp.lt.f32.partialorder %v507_v47, 0.0004427343  ;;  %1103 = vmatprep.subr.bf16.mxu1 %v1160_v14  ;;  %v1162_v15 = vld [vmem:[#allocation10 + $0x18] sm:$0xff]   ;;  %v1165_v16 = vld [vmem:[#allocation10 + $0x30] sm:$0xff]  }
 0x25a   :  { %v473_v33 = vsel %vm472_vm2, %v470_v19, %v467_v21  ;;  %v510_v44 = vadd.f32 %v446_v32, %v398_v56  ;;  %v403_v54 = vmax.f32 %v1548_v31, 0.0  ;;  %vm490_vm7 = vcmp.lt.f32.partialorder %v489_v60, 0.0004427343  ;;  %1104 = vmatpush3.bf16.msra.mxu1 %v1160_v14  ;;  %v1163_v31 = vld [vmem:[#allocation10 + $0x20] sm:$0xff]   ;;  %v1166_v17 = vld [vmem:[#allocation10 + $0x38] sm:$0xff]  }
 0x25b   :  { %v513_v37 = vadd.f32 %v473_v33, %v401_v1  ;;  %v455_v39 = vsel %vm454_vm3, %v452_v29, %v449_v34  ;;  %v963_v18 = vld [vmem:[%s1703_s6] ss:$0 sm:$0xff] }
 0x25c   :  { %v511_v46 = vadd.f32 %v455_v39, %v399_v6  ;;  %v488_v6 = vmul.f32 %v1562_v0, %v487_v52  ;;  %v1161_v0 = vld [vmem:[#allocation10 + $0x10] sm:$0xff]  }
 0x25d   :  { %v1208_v43 = vpop.eup %1207  ;;  %v536_v45 = vpack.c.bf16 %v513_v37, %v512_v36  ;;  %1105 = vmatprep.subr.bf16.mxu1 %v1161_v0 }
 0x25e   :  { %v1210_v48 = vpop.eup %1209  ;;  %v494_v50 = vmul.f32 0.6931472, %v1208_v43  ;;  %v535_v56 = vpack.c.bf16 %v511_v46, %v510_v44  ;;  %1106 = vmatpush3.bf16.msra.mxu1 %v1161_v0 }
 0x25f   :  { %v1212_v55 = vpop.eup %1211  ;;  %v476_v58 = vmul.f32 0.6931472, %v1210_v48  ;;  %1107 = vmatprep.subr.bf16.mxu1 %v1162_v15 }
 0x260   :  { %v500_v61 = vsel %vm1589_vm4, %v497_v51, %v494_v50  ;;  %v503_v63 = vmul.f32 0.6931472, %v1212_v55  ;;  %v1214_v1 = vpop.eup %1213  ;;  %1093 = vmatprep.mubr.bf16.mxu0 %v535_v56 }
 0x261   :  { %v482_v3 = vsel %vm481_vm5, %v479_v62, %v476_v58  ;;  %v485_v5 = vmul.f32 0.6931472, %v1214_v1  ;;  %1094 = vmatmul.mubr.bf16.vlgmr.msra.gmra.mrb[8].mxu0 %v536_v45  ;;  %v516_v7 = vadd.f32 %v500_v61, %v404_v49 }
 0x262   :  { %v509_v4 = vsel %vm508_vm6, %v506_v22, %v503_v63  ;;  %v514_v10 = vadd.f32 %v482_v3, %v402_v53  ;;  %1108 = vmatpush3.bf16.msra.mxu1 %v1162_v15 }
 0x263   :  { %v517_v9 = vadd.f32 %v509_v4, %v405_v2  ;;  %v491_v59 = vsel %vm490_vm7, %v488_v6, %v485_v5  ;;  %1109 = vmatprep.subr.bf16.mxu1 %v1163_v31 }
 0x264   :  { %v515_v12 = vadd.f32 %v491_v59, %v403_v54 }
 0x265   :  { %v538_v25 = vpack.c.bf16 %v517_v9, %v516_v7 }
 0x266   :  { %v537_v13 = vpack.c.bf16 %v515_v12, %v514_v10  ;;  %1110 = vmatpush3.bf16.msra.mxu1 %v1163_v31 }
 0x267   :  { %1111 = vmatprep.subr.bf16.mxu1 %v1164_v8 }
 0x268   :  { %1097 = vmatprep.mubr.bf16.mxu0 %v537_v13 }
 0x269   :  { %1098 = vmatmul.mubr.bf16.gmra.mrb[12].mxu0 %v538_v25 }
 0x26a   :  { %1112 = vmatpush3.bf16.msra.mxu1 %v1164_v8 }
 0x26b   :  { %1113 = vmatprep.subr.bf16.mxu1 %v1165_v16 }
 0x26e   :  { %1114 = vmatpush3.bf16.msra.mxu1 %v1165_v16 }
 0x26f   :  { %1115 = vmatprep.subr.bf16.mxu1 %v1166_v17 }
 0x272   :  { %1116 = vmatpush3.bf16.msra.mxu1 %v1166_v17 }
 0x334   :  { %v1095_v19 = vpop.f32.mrb[8].mxu0 }
 0x335   :  { %v1605_v11 = vadd.f32 %v1095_v19, %v963_v18  ;;  %v627_v20 = vpop.f32.mrb[9].mxu0 }
 0x336   :  { %v1607_v21 = vadd.f32 %v963_v18, %v627_v20  ;;  %v1096_v23 = vpop.f32.mrb[10].mxu0 }
 0x337   :  { %v668_v24 = vand.u32 2147483647, %v1605_v11  ;;  %v1610_v26 = vadd.f32 %v1096_v23, %v963_v18  ;;  %v630_v27 = vpop.f32.mrb[11].mxu0  ;;  %v660_v25 = vmax.f32 %v1605_v11, 0.0 }
 0x338   :  { %v666_v29 = vand.u32 2147483647, %v1607_v21  ;;  %v1613_v30 = vadd.f32 %v963_v18, %v630_v27  ;;  %v658_v13 = vmax.f32 %v1607_v21, 0.0 }
 0x339   :  { %v676_v32 = vsub.f32 0.0, %v668_v24  ;;  %v669_v33 = vand.u32 2147483647, %v1610_v26 }
 0x33a   :  { %v674_v34 = vsub.f32 0.0, %v666_v29  ;;  %v667_v35 = vand.u32 2147483647, %v1613_v30  ;;  %v659_v23 = vmax.f32 %v1613_v30, 0.0 }
 0x33b   :  { %v686_v36 = vmul.f32 1.442695, %v676_v32  ;;  %v677_v37 = vsub.f32 0.0, %v669_v33 }
 0x33c   :  { %v682_v38 = vmul.f32 1.442695, %v674_v34  ;;  %v675_v39 = vsub.f32 0.0, %v667_v35  ;;  %v1099_v40 = vpop.f32.mrb[12].mxu0 }
 0x33d   :  { %1215 = vpow2.f32 %v686_v36  ;;  %v688_v41 = vmul.f32 1.442695, %v677_v37  ;;  %v1617_v42 = vadd.f32 %v1099_v40, %v963_v18  ;;  %v643_v43 = vpop.f32.mrb[13].mxu0 }
 0x33e   :  { %1217 = vpow2.f32 %v682_v38  ;;  %v684_v44 = vmul.f32 1.442695, %v675_v39  ;;  %v1619_v45 = vadd.f32 %v963_v18, %v643_v43  ;;  %v1100_v46 = vpop.f32.mrb[14].mxu0 }
 0x33f   :  { %1219 = vpow2.f32 %v688_v41  ;;  %v672_v47 = vand.u32 2147483647, %v1617_v42  ;;  %v1622_v48 = vadd.f32 %v1100_v46, %v963_v18  ;;  %v646_v49 = vpop.f32.mrb[15].mxu0 }
 0x340   :  { %1221 = vpow2.f32 %v684_v44  ;;  %v670_v50 = vand.u32 2147483647, %v1619_v45  ;;  %v1625_v51 = vadd.f32 %v963_v18, %v646_v49  ;;  %v661_v18 = vmax.f32 %v1610_v26, 0.0 }
 0x341   :  { %v680_v52 = vsub.f32 0.0, %v672_v47  ;;  %v673_v55 = vand.u32 2147483647, %v1622_v48 }
 0x342   :  { %v678_v57 = vsub.f32 0.0, %v670_v50  ;;  %v671_v58 = vand.u32 2147483647, %v1625_v51 }
 0x343   :  { %v694_v60 = vmul.f32 1.442695, %v680_v52  ;;  %v681_v56 = vsub.f32 0.0, %v673_v55 }
 0x344   :  { %v690_v61 = vmul.f32 1.442695, %v678_v57  ;;  %v679_v62 = vsub.f32 0.0, %v671_v58 }
 0x345   :  { %1223 = vpow2.f32 %v694_v60  ;;  %v696_v63 = vmul.f32 1.442695, %v681_v56 }
 0x346   :  { %1225 = vpow2.f32 %v690_v61  ;;  %v692_v22 = vmul.f32 1.442695, %v679_v62 }
 0x347   :  { %v1216_v1 = vpop.eup %1215  ;;  %1227 = vpow2.f32 %v696_v63 }
 0x348   :  { %v1218_v53 = vpop.eup %1217  ;;  %v716_v2 = vadd.f32 1.0, %v1216_v1  ;;  %1229 = vpow2.f32 %v692_v22  ;;  %v719_v9 = vmul.f32 -0.5, %v1216_v1  ;;  %v722_v31 = vand.u32 2147483647, %v1216_v1 }
 0x349   :  { %v1220_v3 = vpop.eup %1219  ;;  %v698_v4 = vadd.f32 1.0, %v1218_v53  ;;  %v701_v54 = vmul.f32 -0.5, %v1218_v53  ;;  %v704_v20 = vand.u32 2147483647, %v1218_v53 }
 0x34a   :  { %v1222_v5 = vpop.eup %1221  ;;  %1231 = vlog2.f32 %v716_v2  ;;  %v725_v6 = vadd.f32 1.0, %v1220_v3  ;;  %v728_v59 = vmul.f32 -0.5, %v1220_v3  ;;  %v720_v15 = vadd.f32 1.0, %v719_v9 }
 0x34b   :  { %1233 = vlog2.f32 %v698_v4  ;;  %v707_v7 = vadd.f32 1.0, %v1222_v5  ;;  %v710_v28 = vmul.f32 -0.5, %v1222_v5  ;;  %v702_v8 = vadd.f32 1.0, %v701_v54 }
 0x34c   :  { %1235 = vlog2.f32 %v725_v6  ;;  %v729_v19 = vadd.f32 1.0, %v728_v59  ;;  %v731_v21 = vand.u32 2147483647, %v1220_v3  ;;  %v721_v35 = vmul.f32 %v1216_v1, %v720_v15 }
 0x34d   :  { %1237 = vlog2.f32 %v707_v7  ;;  %v711_v27 = vadd.f32 1.0, %v710_v28  ;;  %vm1646_vm8 = vcmp.lt.f32.partialorder %v722_v31, 0.0004427343  ;;  %v703_v36 = vmul.f32 %v1218_v53, %v702_v8 }
 0x34e   :  { %v730_v39 = vmul.f32 %v1220_v3, %v729_v19  ;;  %v713_v30 = vand.u32 2147483647, %v1222_v5  ;;  %vm1654_vm9 = vcmp.lt.f32.partialorder %v704_v20, 0.0004427343  ;;  %vm732_vm10 = vcmp.lt.f32.partialorder %v731_v21, 0.0004427343 }
 0x34f   :  { %v1629_v10 = vpop.eup %1223  ;;  %v712_v49 = vmul.f32 %v1222_v5, %v711_v27  ;;  %v664_v7 = vmax.f32 %v1617_v42, 0.0  ;;  %v665_v19 = vmax.f32 %v1622_v48, 0.0  ;;  %v972_v48 = vld [vmem:[%s1705_s8] ss:$0 sm:$0xff]  ;;  %s1357_s8 = scalar_lea.vmem %s932_s10, 1024 }
 0x350   :  { %v1631_v12 = vpop.eup %1225  ;;  %v752_v14 = vadd.f32 1.0, %v1629_v10  ;;  %v755_v29 = vmul.f32 -0.5, %v1629_v10  ;;  %vm714_vm11 = vcmp.lt.f32.partialorder %v713_v30, 0.0004427343  ;;  %v758_v61 = vand.u32 2147483647, %v1629_v10  ;;  %p1358_p12 = scmp.ne.s32.totalorder %s932_s10, %s1357_s8  ;;  %p1363_p0 = scmp.lt.s32.totalorder %s1357_s8, %s1357_s8 }
 0x351   :  { %v1636_v0 = vpop.eup %1227  ;;  %v734_v16 = vadd.f32 1.0, %v1631_v12  ;;  %v737_v43 = vmul.f32 -0.5, %v1631_v12  ;;  %v740_v22 = vand.u32 2147483647, %v1631_v12 }
 0x352   :  { %v1639_v17 = vpop.eup %1229  ;;  %1239 = vlog2.f32 %v752_v14  ;;  %v761_v11 = vadd.f32 1.0, %v1636_v0  ;;  %v764_v44 = vmul.f32 -0.5, %v1636_v0  ;;  %v756_v50 = vadd.f32 1.0, %v755_v29  ;;  %p1364_p1 = por %p1363_p0, %p1362_p13 }
 0x353   :  { %1241 = vlog2.f32 %v734_v16  ;;  %v743_v32 = vadd.f32 1.0, %v1639_v17  ;;  %v746_v58 = vmul.f32 -0.5, %v1639_v17  ;;  %v738_v63 = vadd.f32 1.0, %v737_v43 }
 0x354   :  { %v1232_v24 = vpop.eup %1231  ;;  %1243 = vlog2.f32 %v761_v11  ;;  %v765_v1 = vadd.f32 1.0, %v764_v44  ;;  %v767_v5 = vand.u32 2147483647, %v1636_v0  ;;  %v757_v54 = vmul.f32 %v1629_v10, %v756_v50  ;;  %p1365_p2 = pnand %p1364_p1, %p1358_p12 }
 0x355   :  { %v1234_v33 = vpop.eup %1233  ;;  %v718_v34 = vmul.f32 0.6931472, %v1232_v24  ;;  %1245 = vlog2.f32 %v743_v32  ;;  %v747_v59 = vadd.f32 1.0, %v746_v58  ;;  %vm1666_vm12 = vcmp.lt.f32.partialorder %v758_v61, 0.0004427343 }
 0x356   :  { %v1236_v37 = vpop.eup %1235  ;;  %v700_v38 = vmul.f32 0.6931472, %v1234_v33  ;;  %v749_v15 = vand.u32 2147483647, %v1639_v17  ;;  %v739_v8 = vmul.f32 %v1631_v12, %v738_v63  ;;  %v766_v42 = vmul.f32 %v1636_v0, %v765_v1 }
 0x357   :  { %v724_v40 = vsel %vm1646_vm8, %v721_v35, %v718_v34  ;;  %v727_v41 = vmul.f32 0.6931472, %v1236_v37  ;;  %v1238_v46 = vpop.eup %1237  ;;  %v662_v10 = vmax.f32 %v1619_v45, 0.0  ;;  %vm741_vm13 = vcmp.lt.f32.partialorder %v740_v22, 0.0004427343 }
 0x358   :  { %v706_v52 = vsel %vm1654_vm9, %v703_v36, %v700_v38  ;;  %v709_v57 = vmul.f32 0.6931472, %v1238_v46  ;;  %v772_v60 = vadd.f32 %v724_v40, %v660_v25  ;;  %vm768_vm14 = vcmp.lt.f32.partialorder %v767_v5, 0.0004427343 }
 0x359   :  { %v733_v55 = vsel %vm732_vm10, %v730_v39, %v727_v41  ;;  %v770_v2 = vadd.f32 %v706_v52, %v658_v13  ;;  %v663_v12 = vmax.f32 %v1625_v51, 0.0  ;;  %vm750_vm15 = vcmp.lt.f32.partialorder %v749_v15, 0.0004427343 }
 0x35a   :  { %v773_v56 = vadd.f32 %v733_v55, %v661_v18  ;;  %v715_v62 = vsel %vm714_vm11, %v712_v49, %v709_v57 }
 0x35b   :  { %v771_v4 = vadd.f32 %v715_v62, %v659_v23  ;;  %v748_v23 = vmul.f32 %v1639_v17, %v747_v59 }
 0x35c   :  { %v1240_v53 = vpop.eup %1239  ;;  %v796_v3 = vpack.c.bf16 %v773_v56, %v772_v60 }
 0x35d   :  { %v1242_v6 = vpop.eup %1241  ;;  %v754_v9 = vmul.f32 0.6931472, %v1240_v53  ;;  %v795_v13 = vpack.c.bf16 %v771_v4, %v770_v2 }
 0x35e   :  { %v1244_v25 = vpop.eup %1243  ;;  %v736_v14 = vmul.f32 0.6931472, %v1242_v6 }
 0x35f   :  { %v760_v31 = vsel %vm1666_vm12, %v757_v54, %v754_v9  ;;  %v763_v16 = vmul.f32 0.6931472, %v1244_v25  ;;  %v1246_v18 = vpop.eup %1245  ;;  %1117 = vmatprep.mubr.bf16.mxu1 %v795_v13 }
 0x360   :  { %v742_v11 = vsel %vm741_vm13, %v739_v8, %v736_v14  ;;  %v745_v21 = vmul.f32 0.6931472, %v1246_v18  ;;  %1118 = vmatmul.mubr.bf16.vlgmr.msra.gmra.mrb[8].mxu1 %v796_v3  ;;  %v776_v24 = vadd.f32 %v760_v31, %v664_v7 }
 0x361   :  { %v769_v20 = vsel %vm768_vm14, %v766_v42, %v763_v16  ;;  %v774_v29 = vadd.f32 %v742_v11, %v662_v10 }
 0x362   :  { %v777_v27 = vadd.f32 %v769_v20, %v665_v19  ;;  %v751_v0 = vsel %vm750_vm15, %v748_v23, %v745_v21 }
 0x363   :  { %v775_v32 = vadd.f32 %v751_v0, %v663_v12 }
 0x364   :  { %v798_v45 = vpack.c.bf16 %v777_v27, %v776_v24 }
 0x365   :  { %v797_v33 = vpack.c.bf16 %v775_v32, %v774_v29 }
 0x367   :  { %1121 = vmatprep.mubr.bf16.mxu1 %v797_v33 }
 0x368   :  { %1122 = vmatmul.mubr.bf16.gmra.mrb[12].mxu1 %v798_v45 }
 0x433   :  { %v1119_v34 = vpop.f32.mrb[8].mxu1 }
 0x434   :  { %v896_v35 = vadd.f32 %v1119_v34, %v972_v48  ;;  %v887_v17 = vpop.f32.mrb[9].mxu1 }
 0x435   :  { %v888_v26 = vadd.f32 %v972_v48, %v887_v17  ;;  %v1120_v36 = vpop.f32.mrb[10].mxu1 }
 0x436   :  { %920 = vst [vmem:[#allocation11 + $0x10] sm:$0xff] %v896_v35  ;;  %v899_v37 = vadd.f32 %v1120_v36, %v972_v48  ;;  %v890_v51 = vpop.f32.mrb[11].mxu1 }
 0x437   :  { %918 = vst [vmem:[#allocation11] sm:$0xff] %v888_v26  ;;  %v891_v38 = vadd.f32 %v972_v48, %v890_v51 }
 0x438   :  { %921 = vst [vmem:[#allocation11 + $0x18] sm:$0xff] %v899_v37 }
 0x439   :  { %919 = vst [vmem:[#allocation11 + $0x8] sm:$0xff] %v891_v38 }
 0x43b   :  { %v1123_v39 = vpop.f32.mrb[12].mxu1 }
 0x43c   :  { %v912_v30 = vadd.f32 %v1123_v39, %v972_v48  ;;  %v903_v40 = vpop.f32.mrb[13].mxu1 }
 0x43d   :  { %v904_v41 = vadd.f32 %v972_v48, %v903_v40  ;;  %v1124_v43 = vpop.f32.mrb[14].mxu1 }
 0x43e   :  { %924 = vst [vmem:[#allocation11 + $0x30] sm:$0xff] %v912_v30  ;;  %v915_v44 = vadd.f32 %v1124_v43, %v972_v48  ;;  %v906_v46 = vpop.f32.mrb[15].mxu1 }
 0x43f   :  { %922 = vst [vmem:[#allocation11 + $0x20] sm:$0xff] %v904_v41  ;;  %v907_v47 = vadd.f32 %v972_v48, %v906_v46 }
 0x440   :  { %925 = vst [vmem:[#allocation11 + $0x38] sm:$0xff] %v915_v44 }
 0x441   :  { %923 = vst [vmem:[#allocation11 + $0x28] sm:$0xff] %v907_v47 }
 0x442   :  { %1368 = shalt.err (!%p1365_p2)
}
 0x443   :  { %s1369_s16 = scalar_lea.hbm %s1706_s9, 1024 }
 0x444   :  { %p1370_p3 = scmp.ne.s32.totalorder %s1706_s9, %s1369_s16  ;;  %p1373_p4 = scmp.lt.u32.totalorder %s1369_s16, %s1706_s9 }
 0x446   :  { %p1375_p5 = pnand %p1373_p4, %p1370_p3 }
 0x448   :  { %1378 = shalt.err (!%p1375_p5)
}
 0x449   :  { %937 = dma.vmem_to_hbm [thread:$0]  %s932_s10, 1024, %s1706_s9, [#allocation4], %s1392_s5, %s1392_s5, %s1393_s24  }
 0x44a   :  { %1385 = dma.done.wait [#allocation4], 1024  }
 0x44b   :  { %1386 = vsyncadd [#allocation4], 4294966272 }
 0x44c   :  { %941 = vsyncpa [#allocation3], 1 }
 0x44d   :  { %942 = vsyncpa [#allocation6], 1 }
 0x44e   :  { %943 = vsyncpa [#allocation9], 1 }
 0x44f   :  { %944 = vsyncpa [#allocation4], 1 }

</bundles_post_ra>
